<compile_context>
chip_gen: v7x
topology: tpu7x:2x2x1
jax: 0.10.0
libtpu: 0.0.40
codegen_flags: <defaults>
</compile_context>

<pallas_src>
import math
import functools

import jax
import jax.numpy as jnp
from jax import lax
from jax.experimental import pallas as pl
from jax.experimental.pallas import tpu as pltpu


def _gelu_tanh(x):
    # tanh-form GELU: the transcendental lands on the EUP slot, off the VALU.
    # Max abs deviation from the exact-erf GELU is ~3e-4, inside the bf16 tolerances.
    c = math.sqrt(2.0 / math.pi)
    return 0.5 * x * (1.0 + jnp.tanh(c * (x + 0.044715 * (x * x * x))))


def cnn_kernel(x_ref, mask_ref, w_ref, xout_ref, xp_ref, *, seq_len, hidden, n_taps):
    """One grid step = one batch tile (Bt batch elements, full sequence).

    x_ref    : [Bt, L+2P, H]   bf16, sequence halo zero-padded by the wrapper
    mask_ref : [Bt*L, 1]       int32, 1 = padding position
    w_ref    : [n_taps*H, KCp] bf16 fused tap weights, lane-padded to KCp (mult of 128)
    xout_ref : [Bt*L, KCp]     bf16 activated conv features (lane-dense slab)
    xp_ref   : [1, Bt, KCp]    f32 per-batch-element max over the sequence
    """
    bt = x_ref.shape[0]
    rows = bt * seq_len
    kcp = w_ref.shape[1]

    # n_taps accumulating MXU matmuls over statically shifted sequence windows
    # (the un-expanded input is read from HBM exactly once; the small sublane
    # realigns for offsets 1..2P are XLU work hidden under the DMAs).
    acc = jnp.zeros((rows, kcp), jnp.float32)
    for d in range(n_taps):                       # static unroll, n_taps is tiny
        xs = x_ref[:, d:d + seq_len, :].reshape(rows, hidden)
        wd = w_ref[d * hidden:(d + 1) * hidden, :]
        acc = acc + jnp.dot(xs, wd, preferred_element_type=jnp.float32)

    y = _gelu_tanh(acc)
    # masked_fill_(mask, 1e-12) before pooling (padding positions never win the max).
    y = jnp.where(mask_ref[...] != 0, jnp.float32(1e-12), y)
    xout_ref[...] = y.astype(xout_ref.dtype)                  # bf16 lane-dense store
    xp_ref[0] = jnp.max(y.reshape(bt, seq_len, kcp), axis=1)  # f32 max pool


def _is_multicore_chip():
    """v7x has 2 TensorCores per chip; v5e/v6e have 1 (grid splitting only pays on v7x)."""
    try:
        return "v7" in jax.devices()[0].device_kind.lower()
    except Exception:
        return False


def _choose_batch_tile(batch, seq_len, multi_core):
    """Pick the batch tile Bt (grid has B // Bt steps).

    Policy (per perf review):
      * maximize rows = Bt*L per step up to ROW_CAP (per-step overhead ~0.35us,
        512+ row tiles are near the HBM roofline);
      * never shrink tiles just to create extra grid steps on single-TC chips
        (v5e / v6e);
      * on v7x (2 TCs) split into >=2 parallel steps only when each step still
        keeps >= 256 rows.
    """
    ROW_CAP = 2048   # ~2-3 MiB double-buffered VMEM at H=32 -> fits every generation
    candidates = [bt for bt in range(1, batch + 1)
                  if batch % bt == 0 and (bt * seq_len) % 8 == 0]
    if not candidates:
        # Legal slow path: full-batch block (block dims == array dims) with
        # sub-8-sublane padded stores.  Not hit by the demo config.
        return batch
    fitting = [bt for bt in candidates if bt * seq_len <= ROW_CAP]
    bt = max(fitting) if fitting else min(candidates)
    if multi_core and batch // bt < 2:
        split = [c for c in fitting if batch // c >= 2 and c * seq_len >= 256]
        if split:
            bt = max(split)
    return bt


def cnn_forward(x, mask, weights, kernel_sizes, out_channels):
    """x: [B, L, H] f32; mask: [B, L] (1 = padding); weights[i]: [C, H, k_i] (torch layout)."""
    B, L, H = x.shape
    n_k = len(kernel_sizes)
    C = out_channels
    KC = n_k * C
    KCp = ((KC + 127) // 128) * 128              # lane-dense output width
    P = max(kernel_sizes) // 2
    n_taps = 2 * P + 1
    Lp = L + 2 * P

    # Halo-padded bf16 input (cast BEFORE the pad: the only wrapper pass over x is
    # half-width, and there is no im2col expansion at all).
    x_pad = jnp.pad(x.astype(jnp.bfloat16), ((0, 0), (P, P), (0, 0)))   # [B, Lp, H]

    # Fused block-structured weight: every kernel size's taps stacked along the
    # contraction dim at its union tap offset, zero blocks where a tap offset is
    # outside that kernel's support; N dim zero-padded to KCp for lane-dense stores.
    w_comb = jnp.zeros((n_taps * H, KCp), jnp.float32)
    for ki, (w, k) in enumerate(zip(weights, kernel_sizes)):
        p = k // 2
        wt = jnp.transpose(w.astype(jnp.float32), (2, 1, 0))            # [k, H, C]
        for j in range(k):
            d = j - p + P                                                # union tap offset
            w_comb = w_comb.at[d * H:(d + 1) * H, ki * C:(ki + 1) * C].set(wt[j])
    w_comb = w_comb.astype(jnp.bfloat16)

    mask_flat = mask.astype(jnp.int32).reshape(B * L, 1)

    Bt = _choose_batch_tile(B, L, _is_multicore_chip())
    G = B // Bt
    rows = Bt * L

    kernel = functools.partial(cnn_kernel, seq_len=L, hidden=H, n_taps=n_taps)

    cost = pl.CostEstimate(
        flops=2 * B * L * n_taps * H * KCp,
        transcendentals=B * L * KCp,
        bytes_accessed=(B * Lp * H * 2          # bf16 input
                        + B * L * 4             # mask
                        + n_taps * H * KCp * 2  # fused weight
                        + B * L * KCp * 2       # bf16 feature slab
                        + B * KCp * 4),         # f32 pooled output
    )

    x_slab, xp_slab = pl.pallas_call(
        kernel,
        out_shape=[
            jax.ShapeDtypeStruct((B * L, KCp), jnp.bfloat16),
            jax.ShapeDtypeStruct((G, Bt, KCp), jnp.float32),
        ],
        grid_spec=pltpu.PrefetchScalarGridSpec(
            num_scalar_prefetch=0,
            grid=(G,),
            in_specs=[
                pl.BlockSpec((Bt, Lp, H), lambda b: (b, 0, 0)),
                pl.BlockSpec((rows, 1), lambda b: (b, 0)),
                pl.BlockSpec((n_taps * H, KCp), lambda b: (0, 0)),
            ],
            out_specs=[
                pl.BlockSpec((rows, KCp), lambda b: (b, 0)),
                pl.BlockSpec((1, Bt, KCp), lambda b: (b, 0, 0)),
            ],
        ),
        compiler_params=pltpu.CompilerParams(dimension_semantics=("parallel",)),
        cost_estimate=cost,
    )(x_pad, mask_flat, w_comb)

    # dropout(p=0.0) in eval mode is the identity.  Features are returned in bf16
    # (halved writeback), xp in f32.  The lane padding is sliced off once here.
    # TODO(synk): only the config's gelu + max-pool + keep_length path is implemented
    # (avg/cls pooling and the other activation choices are unused by this config).
    x_out = x_slab.reshape(B, L, KCp)[:, :, :KC]
    xp = xp_slab.reshape(B, KCp)[:, :KC]
    return x_out, xp


def cnn_reference(x, mask, weights, kernel_sizes, out_channels):
    """Pure-JAX f32 reference mirroring the PyTorch forward (NCW conv path, exact erf GELU)."""
    x_t = jnp.transpose(x, (0, 2, 1))  # [B, H, L]
    outs = []
    for w, k in zip(weights, kernel_sizes):
        p = k // 2
        y = lax.conv_general_dilated(
            x_t, w, window_strides=(1,), padding=[(p, p)],
            dimension_numbers=("NCH", "OIH", "NCH"))
        y = y * 0.5 * (1.0 + jax.scipy.special.erf(y / math.sqrt(2.0)))
        outs.append(y)
    y = jnp.concatenate(outs, axis=1)                      # [B, n_k*C, L]
    y = jnp.where(mask[:, None, :] != 0, 1e-12, y)         # masked_fill_
    xp = jnp.max(y, axis=-1)                               # max pooling
    return jnp.transpose(y, (0, 2, 1)), xp


if __name__ == "__main__":
    # config: in_channels=32, out_channels=8, kernel_sizes=[3, 5], activation='gelu',
    #         pooling_strategy='max', keep_length=True, dropout=0.0
    B, L, H, C = 2, 16, 32, 8
    kernel_sizes = [3, 5]

    key = jax.random.PRNGKey(0)
    kx, *kws = jax.random.split(key, 1 + len(kernel_sizes))
    x = jax.random.normal(kx, (B, L, H), dtype=jnp.float32)

    # deterministic Conv1d weights, torch layout [out_channels, in_channels, k], no bias
    weights = []
    for kw, k in zip(kws, kernel_sizes):
        bound = 1.0 / math.sqrt(H * k)
        weights.append(jax.random.uniform(kw, (C, H, k), jnp.float32, -bound, bound))

    # mask: 1 on padding positions (seq lengths 16 and 10)
    lengths = jnp.array([16, 10], dtype=jnp.int32)
    mask = (jnp.arange(L)[None, :] >= lengths[:, None]).astype(jnp.int32)

    x_feat, xp = cnn_forward(x, mask, weights, kernel_sizes, C)
    jax.block_until_ready((x_feat, xp))

    x_ref, xp_ref = cnn_reference(x, mask, weights, kernel_sizes, C)
    # tolerances loosened for bf16 MXU inputs / bf16 feature output + tanh-form GELU
    assert jnp.allclose(x_feat.astype(jnp.float32), x_ref, rtol=2e-2, atol=1e-2), "x_feat mismatch"
    assert jnp.allclose(xp.astype(jnp.float32), xp_ref, rtol=2e-2, atol=1e-2), "xp mismatch"

    print("KERNEL_OK")
</pallas_src>

<mosaic_0001>
module attributes {stable_mosaic.version = 11 : i64} {
  func.func @cnn_kernel(%arg0: i32, %arg1: memref<2x20x32xbf16, #tpu.memory_space<vmem>>, %arg2: memref<32x1xi32, #tpu.memory_space<vmem>>, %arg3: memref<160x128xbf16, #tpu.memory_space<vmem>>, %arg4: memref<32x128xbf16, #tpu.memory_space<vmem>>, %arg5: memref<1x2x128xf32, #tpu.memory_space<vmem>>) attributes {dimension_semantics = [#tpu.dimension_semantics<parallel>], iteration_bounds = array<i64: 1>, scalar_prefetch = 0 : i64, scratch_operands = 0 : i64, tpu.core_type = #tpu.core_type<tc>, window_params = [{transform_indices = @transform_0, window_bounds = array<i64: 2, 20, 32>}, {transform_indices = @transform_1, window_bounds = array<i64: 32, 1>}, {pipeline_mode = #tpu.pipeline_mode<synchronous>, transform_indices = @transform_2, window_bounds = array<i64: 160, 128>}, {transform_indices = @transform_3, window_bounds = array<i64: 32, 128>}, {transform_indices = @transform_4, window_bounds = array<i64: 1, 2, 128>}]} {
    %cst = arith.constant 0.000000e+00 : f32
    %0 = vector.broadcast %cst : f32 to vector<32x128xf32>
    %c0 = arith.constant 0 : index
    %c0_0 = arith.constant 0 : index
    %c0_1 = arith.constant 0 : index
    %1 = vector.load %arg1[%c0, %c0_0, %c0_1] : memref<2x20x32xbf16, #tpu.memory_space<vmem>>, vector<2x16x32xbf16>
    %2 = vector.shape_cast %1 : vector<2x16x32xbf16> to vector<32x32xbf16>
    %c0_2 = arith.constant 0 : index
    %c0_3 = arith.constant 0 : index
    %3 = vector.load %arg3[%c0_2, %c0_3] : memref<160x128xbf16, #tpu.memory_space<vmem>>, vector<32x128xbf16>
    %cst_4 = arith.constant dense<0.000000e+00> : vector<32x128xf32>
    %4 = tpu.matmul %2, %3, %cst_4 {dimension_numbers = #tpu.dot_dimension_numbers<[1], [0], [0], [1], [0, 0, 1, 1], [], []>} : vector<32x32xbf16>, vector<32x128xbf16>, vector<32x128xf32> -> vector<32x128xf32>
    %5 = arith.addf %0, %4 : vector<32x128xf32>
    %c0_5 = arith.constant 0 : index
    %c1 = arith.constant 1 : index
    %c0_6 = arith.constant 0 : index
    %6 = vector.load %arg1[%c0_5, %c1, %c0_6] : memref<2x20x32xbf16, #tpu.memory_space<vmem>>, vector<2x16x32xbf16>
    %7 = vector.shape_cast %6 : vector<2x16x32xbf16> to vector<32x32xbf16>
    %c32 = arith.constant 32 : index
    %c0_7 = arith.constant 0 : index
    %8 = vector.load %arg3[%c32, %c0_7] : memref<160x128xbf16, #tpu.memory_space<vmem>>, vector<32x128xbf16>
    %cst_8 = arith.constant dense<0.000000e+00> : vector<32x128xf32>
    %9 = tpu.matmul %7, %8, %cst_8 {dimension_numbers = #tpu.dot_dimension_numbers<[1], [0], [0], [1], [0, 0, 1, 1], [], []>} : vector<32x32xbf16>, vector<32x128xbf16>, vector<32x128xf32> -> vector<32x128xf32>
    %10 = arith.addf %5, %9 : vector<32x128xf32>
    %c0_9 = arith.constant 0 : index
    %c2 = arith.constant 2 : index
    %c0_10 = arith.constant 0 : index
    %11 = vector.load %arg1[%c0_9, %c2, %c0_10] : memref<2x20x32xbf16, #tpu.memory_space<vmem>>, vector<2x16x32xbf16>
    %12 = vector.shape_cast %11 : vector<2x16x32xbf16> to vector<32x32xbf16>
    %c64 = arith.constant 64 : index
    %c0_11 = arith.constant 0 : index
    %13 = vector.load %arg3[%c64, %c0_11] : memref<160x128xbf16, #tpu.memory_space<vmem>>, vector<32x128xbf16>
    %cst_12 = arith.constant dense<0.000000e+00> : vector<32x128xf32>
    %14 = tpu.matmul %12, %13, %cst_12 {dimension_numbers = #tpu.dot_dimension_numbers<[1], [0], [0], [1], [0, 0, 1, 1], [], []>} : vector<32x32xbf16>, vector<32x128xbf16>, vector<32x128xf32> -> vector<32x128xf32>
    %15 = arith.addf %10, %14 : vector<32x128xf32>
    %c0_13 = arith.constant 0 : index
    %c3 = arith.constant 3 : index
    %c0_14 = arith.constant 0 : index
    %16 = vector.load %arg1[%c0_13, %c3, %c0_14] : memref<2x20x32xbf16, #tpu.memory_space<vmem>>, vector<2x16x32xbf16>
    %17 = vector.shape_cast %16 : vector<2x16x32xbf16> to vector<32x32xbf16>
    %c96 = arith.constant 96 : index
    %c0_15 = arith.constant 0 : index
    %18 = vector.load %arg3[%c96, %c0_15] : memref<160x128xbf16, #tpu.memory_space<vmem>>, vector<32x128xbf16>
    %cst_16 = arith.constant dense<0.000000e+00> : vector<32x128xf32>
    %19 = tpu.matmul %17, %18, %cst_16 {dimension_numbers = #tpu.dot_dimension_numbers<[1], [0], [0], [1], [0, 0, 1, 1], [], []>} : vector<32x32xbf16>, vector<32x128xbf16>, vector<32x128xf32> -> vector<32x128xf32>
    %20 = arith.addf %15, %19 : vector<32x128xf32>
    %c0_17 = arith.constant 0 : index
    %c4 = arith.constant 4 : index
    %c0_18 = arith.constant 0 : index
    %21 = vector.load %arg1[%c0_17, %c4, %c0_18] : memref<2x20x32xbf16, #tpu.memory_space<vmem>>, vector<2x16x32xbf16>
    %22 = vector.shape_cast %21 : vector<2x16x32xbf16> to vector<32x32xbf16>
    %c128 = arith.constant 128 : index
    %c0_19 = arith.constant 0 : index
    %23 = vector.load %arg3[%c128, %c0_19] : memref<160x128xbf16, #tpu.memory_space<vmem>>, vector<32x128xbf16>
    %cst_20 = arith.constant dense<0.000000e+00> : vector<32x128xf32>
    %24 = tpu.matmul %22, %23, %cst_20 {dimension_numbers = #tpu.dot_dimension_numbers<[1], [0], [0], [1], [0, 0, 1, 1], [], []>} : vector<32x32xbf16>, vector<32x128xbf16>, vector<32x128xf32> -> vector<32x128xf32>
    %25 = arith.addf %20, %24 : vector<32x128xf32>
    %cst_21 = arith.constant 5.000000e-01 : f32
    %26 = vector.broadcast %cst_21 : f32 to vector<32x128xf32>
    %27 = arith.mulf %26, %25 : vector<32x128xf32>
    %28 = arith.mulf %25, %25 : vector<32x128xf32>
    %29 = arith.mulf %28, %25 : vector<32x128xf32>
    %cst_22 = arith.constant 4.471500e-02 : f32
    %30 = vector.broadcast %cst_22 : f32 to vector<32x128xf32>
    %31 = arith.mulf %30, %29 : vector<32x128xf32>
    %32 = arith.addf %25, %31 : vector<32x128xf32>
    %cst_23 = arith.constant 0.797884583 : f32
    %33 = vector.broadcast %cst_23 : f32 to vector<32x128xf32>
    %34 = arith.mulf %33, %32 : vector<32x128xf32>
    %35 = math.tanh %34 : vector<32x128xf32>
    %cst_24 = arith.constant 1.000000e+00 : f32
    %36 = vector.broadcast %cst_24 : f32 to vector<32x128xf32>
    %37 = arith.addf %36, %35 : vector<32x128xf32>
    %38 = arith.mulf %27, %37 : vector<32x128xf32>
    %c0_25 = arith.constant 0 : index
    %c0_26 = arith.constant 0 : index
    %39 = vector.load %arg2[%c0_25, %c0_26] : memref<32x1xi32, #tpu.memory_space<vmem>>, vector<32x1xi32>
    %c0_i32 = arith.constant 0 : i32
    %40 = vector.broadcast %c0_i32 : i32 to vector<32x1xi32>
    %41 = arith.cmpi ne, %39, %40 : vector<32x1xi32>
    %cst_27 = arith.constant 9.99999996E-13 : f32
    %42 = vector.shape_cast %41 : vector<32x1xi1> to vector<32x1xi1>
    %43 = vector.broadcast %42 : vector<32x1xi1> to vector<32x128xi1>
    %44 = vector.broadcast %cst_27 : f32 to vector<32x128xf32>
    %45 = arith.select %43, %44, %38 : vector<32x128xi1>, vector<32x128xf32>
    %46 = arith.truncf %45 : vector<32x128xf32> to vector<32x128xbf16>
    %c0_28 = arith.constant 0 : index
    %c0_29 = arith.constant 0 : index
    %47 = vector.load %arg4[%c0_28, %c0_29] : memref<32x128xbf16, #tpu.memory_space<vmem>>, vector<32x128xbf16>
    tpu.vector_store %arg4[%c0_28, %c0_29], %46 {strides = array<i32>} : memref<32x128xbf16, #tpu.memory_space<vmem>>, vector<32x128xbf16>,
    %48 = vector.shape_cast %45 : vector<32x128xf32> to vector<2x16x128xf32>
    %cst_30 = arith.constant dense<0xFF800000> : vector<2x128xf32>
    %49 = vector.multi_reduction <maximumf>, %48, %cst_30 [1] : vector<2x16x128xf32> to vector<2x128xf32>
    %c0_31 = arith.constant 0 : index
    %c0_32 = arith.constant 0 : index
    %c0_33 = arith.constant 0 : index
    %50 = vector.load %arg5[%c0_31, %c0_32, %c0_33] : memref<1x2x128xf32, #tpu.memory_space<vmem>>, vector<1x2x128xf32>
    %51 = vector.shape_cast %50 : vector<1x2x128xf32> to vector<2x128xf32>
    %52 = vector.shape_cast %49 : vector<2x128xf32> to vector<1x2x128xf32>
    tpu.vector_store %arg5[%c0_31, %c0_32, %c0_33], %52 {strides = array<i32>} : memref<1x2x128xf32, #tpu.memory_space<vmem>>, vector<1x2x128xf32>,
    return
  }
  func.func @transform_0(%arg0: i32) -> (i32, i32, i32) {
    %c0_i32 = arith.constant 0 : i32
    %c0_i32_0 = arith.constant 0 : i32
    %c0_i32_1 = arith.constant 0 : i32
    return %arg0, %c0_i32, %c0_i32_0 : i32, i32, i32
  }
  func.func @transform_1(%arg0: i32) -> (i32, i32) {
    %c0_i32 = arith.constant 0 : i32
    %c0_i32_0 = arith.constant 0 : i32
    return %arg0, %c0_i32 : i32, i32
  }
  func.func @transform_2(%arg0: i32) -> (i32, i32) {
    %c0_i32 = arith.constant 0 : i32
    %c0_i32_0 = arith.constant 0 : i32
    %c0_i32_1 = arith.constant 0 : i32
    return %c0_i32, %c0_i32_0 : i32, i32
  }
  func.func @transform_3(%arg0: i32) -> (i32, i32) {
    %c0_i32 = arith.constant 0 : i32
    %c0_i32_0 = arith.constant 0 : i32
    return %arg0, %c0_i32 : i32, i32
  }
  func.func @transform_4(%arg0: i32) -> (i32, i32, i32) {
    %c0_i32 = arith.constant 0 : i32
    %c0_i32_0 = arith.constant 0 : i32
    %c0_i32_1 = arith.constant 0 : i32
    return %arg0, %c0_i32, %c0_i32_0 : i32, i32, i32
  }
}

</mosaic_0001>

<bundles_post_ra>
// kernel: tpu_custom_call.1
= control target key start
LH: loop header
LB: loop body
LE: loop exit
PB: predicated region body
PF: predicated region fallthrough
CT: control target
= control target key end

     0   :  { %10 = vsyncpa [#allocation3], 0  ;;  %vm241_vm0 = vcmask 1042432   ;;  %vm242_vm1 = vcmask 1046532   ;;  %vm102_vm2 = vcmask 261120   ;;  %vm477_vm7 = vcmask 1041408   ;;  %s1168_s0 = inlined_call_operand.vmem [shape: bf16[2,20,32], index: 0, kind: input, shape index: {}]   ;;  %s1169_s1 = inlined_call_operand.vmem [shape: s32[32,1], index: 1, kind: input, shape index: {}]   ;;  %s1170_s2 = inlined_call_operand.vmem [shape: bf16[160,128], index: 2, kind: input, shape index: {}]   ;;  %s1171_s3 = inlined_call_operand.hbm [shape: bf16[32,128], index: 3, kind: output, shape index: {0}]   ;;  %s1172_s4 = inlined_call_operand.hbm [shape: f32[1,2,128], index: 4, kind: output, shape index: {1}]  }
   0x1   :  { %v849_v0 = vld [vmem:[%s1170_s2 + $0x20] sm:$0xff]   ;;  %v850_v1 = vld [vmem:[%s1170_s2 + $0x10] sm:$0xff]   ;;  %v851_v2 = vld [vmem:[%s1170_s2 + $0x28] sm:$0xff]   ;;  %vm29_vm4 = vsmask.f32 3328 }
   0x2   :  { %802 = vmatprep.subr.bf16.mxu0 %v849_v0  ;;  %786 = vmatprep.subr.bf16.mxu1 %v850_v1  ;;  %v852_v3 = vld [vmem:[%s1170_s2 + $0x18] sm:$0xff]   ;;  %v962_v4 = vld [vmem:[%s1168_s0 + $0x4] sm:$0xf]  ;;  %v27_v5 = vld [vmem:[%s1168_s0 + $0x8] sm:$0x1] }
   0x3   :  { %803 = vmatpush3.bf16.msra.mxu0 %v849_v0  ;;  %787 = vmatpush3.bf16.msra.mxu1 %v850_v1  ;;  %v235_v6 = vld [vmem:[%s1168_s0] sm:$0xe]  ;;  %vm970_vm3 = vmor %vm241_vm0, %vm242_vm1  ;;  %v246_v9 = vrot.slane %v962_v4, 5  ;;  %v249_v10 = vrot.slane %v27_v5, 5  ;;  %v978_v12 = vld [vmem:[%s1168_s0 + $0x10] sm:$0xf] }
   0x4   :  { %804 = vmatprep.subr.bf16.mxu0 %v851_v2  ;;  %788 = vmatprep.subr.bf16.mxu1 %v852_v3  ;;  %v725_v8 = vrot.slane %v235_v6, 9  ;;  %v345_v11 = vshrl.u32 %v235_v6, 16  ;;  %v348_v13 = vshll.u32 %v235_v6, 16  ;;  %v983_v14 = vld [vmem:[%s1168_s0 + $0x14] sm:$0x1]  ;;  %v253_v16 = vrot.slane %v978_v12, 5 }
   0x5   :  { %v236_v15 = vld [vmem:[%s1168_s0 + $0xc] sm:$0xe]  ;;  %v248_v18 = vrot.slane %v246_v9, 4  ;;  %v853_v21 = vld [vmem:[%s1170_s2 + $0x30] sm:$0xff]   ;;  %v256_v24 = vrot.slane %v983_v14, 5  ;;  %v1011_v30 = vld [vmem:[%s1170_s2] sm:$0xff]  }
   0x6   :  { %v247_v17 = vsel %vm970_vm3, %v725_v8, %v246_v9  ;;  %v991_v19 = vrot.slane %v345_v11, 5  ;;  %v726_v20 = vrot.slane %v236_v15, 9  ;;  %v996_v22 = vrot.slane %v348_v13, 6  ;;  %v1006_v29 = vld [vmem:[%s1168_s0] sm:$0xf]  ;;  %v855_v39 = vld [vmem:[%s1170_s2 + $0x38] sm:$0xff]  }
   0x7   :  { %805 = vmatpush3.bf16.msra.mxu0 %v851_v2  ;;  %789 = vmatpush3.bf16.msra.mxu1 %v852_v3  ;;  %v255_v23 = vrot.slane %v253_v16, 4  ;;  %v368_v25 = vshrl.u32 %v236_v15, 16  ;;  %v250_v26 = vsel %vm970_vm3, %v248_v18, %v249_v10  ;;  %v371_v28 = vshll.u32 %v236_v15, 16  ;;  %v1020_v34 = vld [vmem:[%s1168_s0 + $0xc] sm:$0xf]  ;;  %v1040_v56 = vld [vmem:[%s1170_s2 + $0x40] sm:$0xff]  }
   0x8   :  { %v254_v27 = vsel %vm970_vm3, %v726_v20, %v253_v16  ;;  %810 = vmatprep.subr.bf16.mxu0 %v853_v21  ;;  %v727_v31 = vcombine.low %v247_v17, %v250_v26  ;;  %vm30_vm5 = vsmask.f32 7440  ;;  %v33_v37 = vshrl.u32 %v1006_v29, 16  ;;  %794 = vmatprep.subr.bf16.mxu1 %v1011_v30  ;;  %v1053_v1 = vld [vmem:[%s1168_s0 + $0x8] sm:$0x3] }
   0x9   :  { %v257_v32 = vsel %vm970_vm3, %v255_v23, %v256_v24  ;;  %v1015_v33 = vrot.slane %v368_v25, 5  ;;  %v1022_v36 = vrot.slane %v371_v28, 6  ;;  %v36_v38 = vshll.u32 %v1006_v29, 16  ;;  %vm1044_vm6 = vmor %vm29_vm4, %vm30_vm5  ;;  %v1062_v10 = vld [vmem:[%s1168_s0 + $0x14] sm:$0x3] }
   0xa   :  { %v728_v35 = vcombine.low %v254_v27, %v257_v32  ;;  %806 = vmatprep.mubr.msk.bf16.mxu0 %vm102_vm2, %v727_v31  ;;  %v42_v40 = vshll.u32 %v962_v4, 16  ;;  %v46_v41 = vshrl.u32 %v962_v4, 16  ;;  %v52_v42 = vshll.u32 %v27_v5, 16  ;;  %v471_v31 = vld [vmem:[%s1168_s0] sm:$0xc] }
   0xb   :  { %v57_v43 = vshrl.u32 %v1020_v34, 16  ;;  %v35_v44 = vrot.slane %v33_v37, 4  ;;  %v38_v45 = vrot.slane %v36_v38, 5  ;;  %v60_v46 = vshll.u32 %v1020_v34, 16 }
   0xc   :  { %807 = vmatmul.mubr.msk.bf16.vlgmr.msra.gmra.mrb[0].mxu0 %vm102_vm2, %v728_v35  ;;  %v66_v47 = vshll.u32 %v978_v12, 16  ;;  %v44_v48 = vrot.slane %v42_v40, 5  ;;  %v48_v49 = vrot.slane %v46_v41, 4  ;;  %v54_v50 = vrot.slane %v52_v42, 5 }
   0xd   :  { %v353_v51 = vrot.slane %v46_v41, 5  ;;  %811 = vmatpush3.bf16.msra.mxu0 %v853_v21  ;;  %v39_v52 = vor.u32 %v38_v45, %v35_v44  ;;  %v354_v53 = vrot.slane %v42_v40, 6  ;;  %v59_v54 = vrot.slane %v57_v43, 4 }
   0xe   :  { %v62_v55 = vrot.slane %v60_v46, 5  ;;  %812 = vmatprep.subr.bf16.mxu0 %v855_v39  ;;  %v49_v58 = vor.u32 %v48_v49, %v44_v48  ;;  %v68_v59 = vrot.slane %v66_v47, 5  ;;  %v70_v60 = vshrl.u32 %v978_v12, 16 }
   0xf   :  { %v76_v61 = vshll.u32 %v983_v14, 16  ;;  %v40_v62 = vrot.slane %v39_v52, 4  ;;  %v377_v0 = vrot.slane %v66_v47, 6  ;;  %vm341_vm8 = vsmask.f32 2304 }
  0x10   :  { %v63_v63 = vor.u32 %v62_v55, %v59_v54  ;;  %v50_v2 = vrot.slane %v49_v58, 4  ;;  %v72_v3 = vrot.slane %v70_v60, 4  ;;  %vm342_vm9 = vsmask.f32 6416 }
  0x11   :  { %v78_v5 = vrot.slane %v76_v61, 5  ;;  %813 = vmatpush3.bf16.msra.mxu0 %v855_v39  ;;  %v45_v6 = vsel %vm1044_vm6, %v40_v62, %v44_v48  ;;  %v351_v8 = vor.u32 %v996_v22, %v991_v19  ;;  %v355_v9 = vor.u32 %v354_v53, %v353_v51  ;;  %vm1067_vm10 = vmor %vm341_vm8, %vm342_vm9 }
  0x12   :  { %v64_v7 = vrot.slane %v63_v63, 4  ;;  %818 = vmatprep.subr.bf16.mxu0 %v1040_v56  ;;  %v55_v11 = vsel %vm1044_vm6, %v50_v2, %v54_v50  ;;  %v73_v13 = vor.u32 %v72_v3, %v68_v59  ;;  %v359_v15 = vshrl.u32 %v1053_v1, 16 }
  0x13   :  { %v362_v16 = vshll.u32 %v1053_v1, 16  ;;  %v713_v17 = vcombine.low %v45_v6, %v55_v11  ;;  %v352_v19 = vrot.slane %v351_v8, 4  ;;  %v357_v20 = vrot.slane %v355_v9, 4 }
  0x14   :  { %v69_v18 = vsel %vm1044_vm6, %v64_v7, %v68_v59  ;;  %v74_v21 = vrot.slane %v73_v13, 4  ;;  %v361_v22 = vrot.slane %v359_v15, 5  ;;  %v374_v24 = vor.u32 %v1022_v36, %v1015_v33 }
  0x15   :  { %v364_v23 = vrot.slane %v362_v16, 6  ;;  %790 = vmatprep.mubr.msk.bf16.mxu1 %vm102_vm2, %v713_v17  ;;  %v356_v25 = vsel %vm1067_vm10, %v352_v19, %v355_v9  ;;  %v376_v26 = vrot.slane %v70_v60, 5  ;;  %v382_v27 = vshrl.u32 %v1062_v10, 16 }
  0x16   :  { %v385_v28 = vshll.u32 %v1062_v10, 16  ;;  %v79_v32 = vsel %vm1044_vm6, %v74_v21, %v78_v5  ;;  %v375_v37 = vrot.slane %v374_v24, 4  ;;  %v719_v33 = vcombine.low %v1006_v29, %v962_v4 }
  0x17   :  { %v365_v35 = vor.u32 %v364_v23, %v361_v22 }
  0x18   :  { %11 = vsyncpa [#allocation5], 0  ;;  %v714_v36 = vcombine.low %v69_v18, %v79_v32  ;;  %v856_v38 = vld [vmem:[%s1170_s2 + $0x8] sm:$0xff]   ;;  %v378_v39 = vor.u32 %v377_v0, %v376_v26  ;;  %v384_v40 = vrot.slane %v382_v27, 5  ;;  %v387_v41 = vrot.slane %v385_v28, 6  ;;  %v613_v44 = vld [vmem:[%s1169_s1 + $0x10] sm:$0xff] }
  0x19   :  { %v366_v42 = vsel %vm1067_vm10, %v357_v20, %v365_v35  ;;  %vm478_vm11 = vcmask 1045508   ;;  %v739_v43 = vrot.slane %v471_v31, 10  ;;  %v482_v49 = vrot.slane %v962_v4, 6  ;;  %v611_v51 = vld [vmem:[%s1169_s1] sm:$0xff]  ;;  %v614_v52 = vld [vmem:[%s1169_s1 + $0x18] sm:$0xff]  ;;  %v612_v4 = vld [vmem:[%s1169_s1 + $0x8] sm:$0xff] }
  0x1a   :  { %791 = vmatmul.mubr.msk.bf16.vlgmr.msra.gmra.mrb[0].mxu1 %vm102_vm2, %v714_v36  ;;  %v733_v29 = vcombine.low %v356_v25, %v366_v42  ;;  %v379_v45 = vsel %vm1067_vm10, %v375_v37, %v378_v39  ;;  %v380_v46 = vrot.slane %v378_v39, 4  ;;  %v388_v47 = vor.u32 %v387_v41, %v384_v40  ;;  %vm1101_vm12 = vmor %vm477_vm7, %vm478_vm11  ;;  %v860_v55 = vld [vmem:[%s1170_s2 + $0x48] sm:$0xff]  }
  0x1b   :  { %795 = vmatpush3.bf16.msra.mxu1 %v1011_v30  ;;  %798 = vmatprep.mubr.msk.bf16.mxu1 %vm102_vm2, %v719_v33  ;;  %v485_v50 = vrot.slane %v1053_v1, 6  ;;  %v489_v53 = vrot.slane %v978_v12, 6  ;;  %vm617_vm13 = vcmp.ne.s32.totalorder %v613_v44, 0  ;;  %v483_v57 = vsel %vm1101_vm12, %v739_v43, %v482_v49  ;;  %v472_v59 = vld [vmem:[%s1168_s0 + $0xc] sm:$0xc]  ;;  %s918_s0 = smov [#allocation2]  }
  0x1c   :  { %796 = vmatprep.subr.bf16.mxu1 %v856_v38  ;;  %814 = vmatprep.mubr.msk.bf16.mxu0 %vm102_vm2, %v733_v29  ;;  %v389_v30 = vsel %vm1067_vm10, %v380_v46, %v388_v47  ;;  %v484_v58 = vrot.slane %v482_v49, 4  ;;  %v917_v60 = vmov 0   ;;  %vm615_vm14 = vcmp.ne.s32.totalorder %v611_v51, 0  ;;  %s688_s1 = sshll.u32 %s918_s0, 4  ;;  %s689_s1 = int_to_ptr.vmem [resolvable:$true] %s688_s1 }
  0x1d   :  { %v734_v54 = vcombine.low %v379_v45, %v389_v30  ;;  %848 = vset.pattern.permute.xlu1 %v917_v60  ;;  %847 = vset.pattern.permute.xlu0 %v917_v60  ;;  %v621_v61 = vsel %vm617_vm13, 1, %v917_v60  ;;  %vm618_vm15 = vcmp.ne.s32.totalorder %v614_v52, 0  ;;  %v619_v63 = vsel %vm615_vm14, 1, %v917_v60  ;;  %s869_s2 = scalar_lea.vmem %s689_s1, 256  ;;  %p874_p1 = scmp.lt.s32.totalorder %s689_s1, %s689_s1 }
  0x1e   :  { %v486_v62 = vsel %vm1101_vm12, %v484_v58, %v485_v50  ;;  %vm616_vm0 = vcmp.ne.s32.totalorder %v612_v4, 0  ;;  %v740_v1 = vrot.slane %v472_v59, 10  ;;  %v491_v2 = vrot.slane %v489_v53, 4  ;;  %630 = vperm.xlu1 %848, %v621_v61   ;;  %624 = vperm.xlu0 %847, %v619_v63   ;;  %p870_p0 = scmp.ne.s32.totalorder %s689_s1, %s869_s2  ;;  %p875_p2 = scmp.lt.s32.totalorder %s869_s2, %s869_s2 }
  0x1f   :  { %797 = vmatpush3.bf16.msra.mxu1 %v856_v38  ;;  %815 = vmatmul.mubr.msk.bf16.vlgmr.msra.gmra.mrb[0].mxu0 %vm102_vm2, %v734_v54  ;;  %v741_v0 = vcombine.low %v483_v57, %v486_v62  ;;  %v492_v3 = vrot.slane %v1062_v10, 6  ;;  %v622_v5 = vsel %vm618_vm15, 1, %v917_v60  ;;  %v720_v6 = vcombine.low %v1020_v34, %v978_v12 }
  0x20   :  { %819 = vmatpush3.bf16.msra.mxu0 %v1040_v56  ;;  %v620_v7 = vsel %vm616_vm0, 1, %v917_v60  ;;  %v490_v8 = vsel %vm1101_vm12, %v740_v1, %v489_v53  ;;  %p876_p3 = por %p875_p2, %p874_p1 }
  0x21   :  { %820 = vmatprep.subr.bf16.mxu0 %v860_v55  ;;  %822 = vmatprep.mubr.msk.bf16.mxu0 %vm102_vm2, %v741_v0  ;;  %v493_v56 = vsel %vm1101_vm12, %v491_v2, %v492_v3 }
  0x22   :  { %633 = vperm.xlu1 %848, %v622_v5   ;;  %627 = vperm.xlu0 %847, %v620_v7   ;;  %v742_v9 = vcombine.low %v490_v8, %v493_v56  ;;  %p877_p4 = pnand %p876_p3, %p870_p0 }
  0x24   :  { %821 = vmatpush3.bf16.msra.mxu0 %v860_v55 }
  0x26   :  { %799 = vmatmul.mubr.msk.bf16.vlgmr.msra.gmra.mrb[0].mxu1 %vm102_vm2, %v720_v6 }
  0x2b   :  { %823 = vmatmul.mubr.msk.bf16.vlgmr.msra.gmra.mrb[0].mxu0 %vm102_vm2, %v742_v9 }
  0x9d   :  { %v631_v44 = vpop.permute.xlu1 %630  ;;  %v625_v29 = vpop.permute.xlu0 %624 }
  0x9e   :  { %vm637_vm1 = vcmp.eq.s32.totalorder %v631_v44, 1  ;;  %vm635_vm3 = vcmp.eq.s32.totalorder %v625_v29, 1 }
  0xa1   :  { %v634_v53 = vpop.permute.xlu1 %633  ;;  %v628_v57 = vpop.permute.xlu0 %627 }
  0xa2   :  { %vm638_vm2 = vcmp.eq.s32.totalorder %v634_v53, 1  ;;  %vm636_vm4 = vcmp.eq.s32.totalorder %v628_v57, 1 }
  0xf9   :  { %v800_v10 = vpop.f32.mrb[0].mxu1 }
  0xfa   :  { %v220_v11 = vpop.f32.mrb[1].mxu1 }
  0xfb   :  { %v801_v12 = vpop.f32.mrb[2].mxu1 }
  0xfc   :  { %v223_v34 = vpop.f32.mrb[3].mxu1 }
  0xfe   :  { %v824_v13 = vpop.f32.mrb[0].mxu0 }
  0xff   :  { %v826_v14 = vadd.f32 %v824_v13, %v800_v10  ;;  %v556_v15 = vpop.f32.mrb[1].mxu0 }
 0x100   :  { %v827_v16 = vadd.f32 %v556_v15, %v220_v11  ;;  %v825_v17 = vpop.f32.mrb[2].mxu0 }
 0x101   :  { %v581_v18 = vmul.f32 %v826_v14, %v826_v14  ;;  %v828_v19 = vadd.f32 %v825_v17, %v801_v12  ;;  %v559_v20 = vpop.f32.mrb[3].mxu0  ;;  %v577_v47 = vmul.f32 0.5, %v826_v14 }
 0x102   :  { %v579_v21 = vmul.f32 %v827_v16, %v827_v16  ;;  %v829_v22 = vadd.f32 %v559_v20, %v223_v34  ;;  %v575_v50 = vmul.f32 0.5, %v827_v16 }
 0x103   :  { %v585_v23 = vmul.f32 %v826_v14, %v581_v18  ;;  %v582_v24 = vmul.f32 %v828_v19, %v828_v19  ;;  %v578_v4 = vmul.f32 0.5, %v828_v19 }
 0x104   :  { %v583_v25 = vmul.f32 %v827_v16, %v579_v21  ;;  %v580_v26 = vmul.f32 %v829_v22, %v829_v22  ;;  %v576_v58 = vmul.f32 0.5, %v829_v22 }
 0x105   :  { %v589_v27 = vmul.f32 0.044715, %v585_v23  ;;  %v586_v28 = vmul.f32 %v828_v19, %v582_v24 }
 0x106   :  { %v587_v31 = vmul.f32 0.044715, %v583_v25  ;;  %v584_v32 = vmul.f32 %v829_v22, %v580_v26 }
 0x107   :  { %v593_v35 = vadd.f32 %v826_v14, %v589_v27  ;;  %v590_v37 = vmul.f32 0.044715, %v586_v28 }
 0x108   :  { %v591_v33 = vadd.f32 %v827_v16, %v587_v31  ;;  %v588_v36 = vmul.f32 0.044715, %v584_v32 }
 0x109   :  { %v597_v38 = vmul.f32 0.7978846, %v593_v35  ;;  %v594_v39 = vadd.f32 %v828_v19, %v590_v37 }
 0x10a   :  { %v595_v40 = vmul.f32 0.7978846, %v591_v33  ;;  %v592_v41 = vadd.f32 %v829_v22, %v588_v36 }
 0x10b   :  { %861 = vtanh.f32 %v597_v38  ;;  %v598_v42 = vmul.f32 0.7978846, %v594_v39 }
 0x10c   :  { %863 = vtanh.f32 %v595_v40  ;;  %v596_v43 = vmul.f32 0.7978846, %v592_v41 }
 0x10d   :  { %865 = vtanh.f32 %v598_v42 }
 0x10e   :  { %867 = vtanh.f32 %v596_v43 }
 0x115   :  { %v862_v45 = vpop.eup %861 }
 0x116   :  { %v864_v46 = vpop.eup %863  ;;  %v605_v48 = vadd.f32 1.0, %v862_v45 }
 0x117   :  { %v866_v49 = vpop.eup %865  ;;  %v603_v51 = vadd.f32 1.0, %v864_v46 }
 0x118   :  { %v868_v52 = vpop.eup %867  ;;  %v609_v30 = vmul.f32 %v605_v48, %v577_v47  ;;  %v606_v54 = vadd.f32 1.0, %v866_v49 }
 0x119   :  { %v607_v55 = vmul.f32 %v603_v51, %v575_v50  ;;  %v604_v59 = vadd.f32 1.0, %v868_v52 }
 0x11a   :  { %v610_v60 = vmul.f32 %v606_v54, %v578_v4  ;;  %v641_v62 = vsel %vm637_vm1, 1e-12, %v609_v30 }
 0x11b   :  { %v608_v61 = vmul.f32 %v604_v59, %v576_v58  ;;  %v639_v0 = vsel %vm635_vm3, 1e-12, %v607_v55 }
 0x11c   :  { %v642_v63 = vsel %vm638_vm2, 1e-12, %v610_v60 }
 0x11d   :  { %v763_v1 = vpack.c.bf16 %v642_v63, %v641_v62  ;;  %v670_v2 = vmax.f32 %v641_v62, %v642_v63  ;;  %v640_v3 = vsel %vm636_vm4, 1e-12, %v608_v61 }
 0x11e   :  { %v758_v5 = vpack.c.bf16 %v640_v3, %v639_v0  ;;  %v663_v6 = vmax.f32 %v639_v0, %v640_v3 }
 0x11f   :  { %765 = vst [vmem:[#allocation2 + $0x8] sm:$0xff] %v763_v1   ;;  %v671_v7 = vrot.slane %v670_v2, 4 }
 0x120   :  { %759 = vst [vmem:[#allocation2] sm:$0xff] %v758_v5   ;;  %v664_v8 = vrot.slane %v663_v6, 4 }
 0x121   :  { %v672_v56 = vmax.f32 %v670_v2, %v671_v7 }
 0x122   :  { %880 = shalt.err (!%p877_p4)
}
 0x123   :  { %s881_s17 = scalar_lea.hbm %s1171_s3, 256 }
 0x124   :  { %p882_p5 = scmp.ne.s32.totalorder %s1171_s3, %s881_s17  ;;  %p885_p6 = scmp.lt.u32.totalorder %s881_s17, %s1171_s3 }
 0x126   :  { %p887_p7 = pnand %p885_p6, %p882_p5 }
 0x128   :  { %890 = shalt.err (!%p887_p7)
}
 0x129   :  { %s919_s22 = smov 64   ;;  %s920_s23 = smov 4   ;;  %v665_v9 = vmax.f32 %v663_v6, %v664_v8  ;;  %v673_v10 = vrot.slane %v672_v56, 2  ;;  %vm679_vm5 = vcmask 1041409  }
 0x12a   :  { %694 = dma.vmem_to_hbm [thread:$0]  %s689_s1, 256, %s1171_s3, [#allocation3], %s919_s22, %s919_s22, %s920_s23  }
 0x12b   :  { %v666_v11 = vrot.slane %v665_v9, 2  ;;  %v674_v12 = vmax.f32 %v672_v56, %v673_v10  ;;  %s921_s26 = smov [#allocation4]  }
 0x12c   :  { %s701_s27 = sshll.u32 %s921_s26, 4  ;;  %s702_s27 = int_to_ptr.vmem [resolvable:$true] %s701_s27 }
 0x12d   :  { %v667_v34 = vmax.f32 %v665_v9, %v666_v11  ;;  %v675_v13 = vrot.slane %v674_v12, 1  ;;  %s891_s28 = scalar_lea.vmem %s702_s27, 32  ;;  %p896_p9 = scmp.lt.s32.totalorder %s702_s27, %s702_s27 }
 0x12e   :  { %p892_p8 = scmp.ne.s32.totalorder %s702_s27, %s891_s28  ;;  %p897_p10 = scmp.lt.s32.totalorder %s891_s28, %s891_s28 }
 0x12f   :  { %v668_v14 = vrot.slane %v667_v34, 1  ;;  %v676_v15 = vmax.f32 %v674_v12, %v675_v13 }
 0x130   :  { %p898_p11 = por %p897_p10, %p896_p9 }
 0x131   :  { %v669_v16 = vmax.f32 %v667_v34, %v668_v14 }
 0x132   :  { %p899_p12 = pnand %p898_p11, %p892_p8 }
 0x133   :  { %v680_v17 = vsel %vm679_vm5, %v676_v15, %v669_v16 }
 0x134   :  { %682 = vst [vmem:[#allocation4] sm:$0x3] %v680_v17 }
 0x135   :  { %902 = shalt.err (!%p899_p12)
}
 0x136   :  { %s903_s30 = scalar_lea.hbm %s1172_s4, 32 }
 0x137   :  { %p904_p13 = scmp.ne.s32.totalorder %s1172_s4, %s903_s30  ;;  %p907_p0 = scmp.lt.u32.totalorder %s903_s30, %s1172_s4 }
 0x139   :  { %p909_p1 = pnand %p907_p0, %p904_p13 }
 0x13b   :  { %912 = shalt.err (!%p909_p1)
}
 0x13c   :  { %704 = dma.vmem_to_hbm [thread:$0]  %s702_s27, 32, %s1172_s4, [#allocation5]  }
 0x13d   :  { %913 = dma.done.wait [#allocation3], 256  }
 0x13e   :  { %914 = vsyncadd [#allocation3], 4294967040 }
 0x13f   :  { %915 = dma.done.wait [#allocation5], 32  }
 0x140   :  { %916 = vsyncadd [#allocation5], 4294967264 }
 0x141   :  { %711 = vsyncpa [#allocation3], 1 }
 0x142   :  { %712 = vsyncpa [#allocation5], 1 }

</bundles_post_ra>
